<compile_context>
chip_gen: v6e
topology: v6e:2x2x1
jax: 0.10.0
libtpu: 0.0.40
codegen_flags: <defaults>
</compile_context>

<pallas_src>
import functools

import jax
import jax.numpy as jnp
from jax.experimental import pallas as pl
from jax.experimental.pallas import tpu as pltpu


def _loss_m3_kernel(total_b, tile_b, steps_per_chunk,
                    logits_ref, ptrue_ref, rpred_ref, rtrue_ref,
                    centers_ref, cn2_ref, l1_ref, l2_ref):
    chunk = pl.program_id(0)   # "parallel" batch-chunk axis (2 TCs on v7x)
    step = pl.program_id(1)    # "arbitrary" reduction axis within the chunk

    @pl.when(step == 0)
    def _init():
        l1_ref[...] = jnp.zeros_like(l1_ref)
        l2_ref[...] = jnp.zeros_like(l2_ref)

    # Upcast AFTER the (possibly bf16) tiles are already in VMEM.
    logits = logits_ref[...].astype(jnp.float32)            # (TB, K)
    pt = ptrue_ref[...].astype(jnp.float32)                 # (TB, K) target distribution

    # Rows >= total_b are padding (short last tile and/or clamped chunk tail) -> mask them.
    row_start = (chunk * steps_per_chunk + step) * tile_b
    row_ids = jax.lax.broadcasted_iota(jnp.int32, (tile_b, 1), 0) + row_start
    valid = row_ids < total_b                                # (TB, 1)

    # ---- stable softmax pieces; the (TB, K) log_softmax is never materialized -------------
    row_max = jnp.max(logits, axis=1, keepdims=True)
    z = logits - row_max                                     # (TB, K)
    ez = jnp.exp(z)
    sez = jnp.sum(ez, axis=1, keepdims=True)                 # (TB, 1)
    lse = jnp.log(sez)                                       # (TB, 1)
    sm = ez / sez                                            # softmax (exact division)

    # ---- fused per-row KL term: sum_k pt * (log pt - (z - lse)) ----------------------------
    xlogx = jnp.where(pt > 0.0, pt * jnp.log(pt), 0.0)       # 0*log(0) := 0 (torch kl_div)
    kl_row = (jnp.sum(xlogx - pt * z, axis=1, keepdims=True)
              + jnp.sum(pt, axis=1, keepdims=True) * lse)    # (TB, 1)

    # ---- soft-binned SE: sum_k sm*||r - c_k||^2 = ||r||^2 + sum_k sm*(||c_k||^2 - 2 r.c_k) -
    centers = centers_ref[...].astype(jnp.float32)           # (K, D)
    r = rtrue_ref[...].astype(jnp.float32) - rpred_ref[...].astype(jnp.float32)   # (TB, D)
    rn2 = jnp.sum(r * r, axis=1, keepdims=True)              # (TB, 1)
    rc = jax.lax.dot_general(r, centers, (((1,), (1,)), ((), ())),
                             preferred_element_type=jnp.float32)                  # (TB, K)
    cn2 = cn2_ref[...]                                       # (1, K) f32, precomputed
    l2_row = rn2 + jnp.sum(sm * (cn2 - 2.0 * rc), axis=1, keepdims=True)          # (TB, 1)

    kl_row = jnp.where(valid, kl_row, 0.0)
    l2_row = jnp.where(valid, l2_row, 0.0)

    l1_ref[...] += jnp.sum(kl_row, keepdims=True).reshape(1, 1, 1)
    l2_ref[...] += jnp.sum(l2_row, keepdims=True).reshape(1, 1, 1)


_NUM_CHUNKS = 2                            # v7x: one chunk per TensorCore; serial on v5e/v6e
_VMEM_LIMIT_BYTES = 32 * 1024 * 1024       # <= scoped default on v6e/v7x; raises v5e's 16 MiB
_STREAM_BUDGET_BYTES = 20 * 1024 * 1024    # streamed tiles + f32 temps; headroom under limit


def _pick_tile_b(B, K, D, itemsize, requested=None):
    """Largest multiple-of-8 batch tile whose double-buffered streamed inputs plus in-kernel
    f32 temporaries fit the streaming budget (total stays under v7x's 64 MiB physical VMEM)."""
    if B <= 8:
        return B                           # block == full dim: always layout-legal
    budget = _STREAM_BUDGET_BYTES
    budget -= 2 * K * D * itemsize + 2 * 4 * K        # resident centers + cn2 (double-buffered)
    per_row = 2 * (2 * K + 2 * D) * itemsize + 4 * (6 * K + 4 * D)   # streams + f32 temps
    cap = max(8, budget // per_row)
    if requested is not None:
        cap = min(cap, max(8, int(requested)))
    tb = min(int(cap), B)
    return max(8, (tb // 8) * 8)


def loss_m3_pallas(logits, targets, resid_pred, resid_true, centers, alpha, *, tile_b=None):
    B, K = logits.shape
    Kc, D = centers.shape
    assert Kc == K and targets.shape == (B, K)
    assert resid_pred.shape == (B, D) and resid_true.shape == (B, D)

    # ||c_k||^2, computed once on the host side of the call (tiny).
    cn2 = jnp.sum(jnp.square(centers.astype(jnp.float32)), axis=1).reshape(1, K)

    itemsize = max(x.dtype.itemsize for x in (logits, targets, resid_pred, resid_true))
    tb = _pick_tile_b(B, K, D, itemsize, tile_b)
    num_tiles = -(-B // tb)
    nc = min(_NUM_CHUNKS, num_tiles)
    steps = -(-num_tiles // nc)

    def tile_idx(c, i):
        # Clamp so a chunk's tail steps re-read the last valid tile; their rows are masked
        # out in-kernel (row_start >= B), so the math stays exact and no DMA goes fully OOB.
        return jnp.minimum(c * steps + i, num_tiles - 1)

    cost = pl.CostEstimate(
        flops=int(2 * B * K * D + 16 * B * K + 5 * B * D),
        transcendentals=int(2 * B * K + B),
        bytes_accessed=int(itemsize * (2 * B * K + 2 * B * D + K * D) + 4 * K + 8 * nc),
    )

    kernel = functools.partial(_loss_m3_kernel, B, tb, steps)
    l1_parts, l2_parts = pl.pallas_call(
        kernel,
        out_shape=(jax.ShapeDtypeStruct((nc, 1, 1), jnp.float32),
                   jax.ShapeDtypeStruct((nc, 1, 1), jnp.float32)),
        grid_spec=pltpu.PrefetchScalarGridSpec(
            num_scalar_prefetch=0,
            grid=(nc, steps),
            in_specs=[
                pl.BlockSpec((tb, K), lambda c, i: (tile_idx(c, i), 0)),   # logits tile
                pl.BlockSpec((tb, K), lambda c, i: (tile_idx(c, i), 0)),   # target-dist tile
                pl.BlockSpec((tb, D), lambda c, i: (tile_idx(c, i), 0)),   # resid_pred tile
                pl.BlockSpec((tb, D), lambda c, i: (tile_idx(c, i), 0)),   # resid_true tile
                pl.BlockSpec((K, D), lambda c, i: (0, 0)),                 # centers (constant)
                pl.BlockSpec((1, K), lambda c, i: (0, 0)),                 # ||c_k||^2 (constant)
            ],
            out_specs=[
                pl.BlockSpec((1, 1, 1), lambda c, i: (c, 0, 0)),           # per-chunk KL partial
                pl.BlockSpec((1, 1, 1), lambda c, i: (c, 0, 0)),           # per-chunk SE partial
            ],
        ),
        compiler_params=pltpu.CompilerParams(
            dimension_semantics=("parallel", "arbitrary"),
            vmem_limit_bytes=_VMEM_LIMIT_BYTES),
        cost_estimate=cost,
    )(logits, targets, resid_pred, resid_true, centers, cn2)

    l1 = jnp.sum(l1_parts) / (B * K)      # KLDivLoss legacy 'mean' over all B*K elements
    l2 = jnp.sum(l2_parts) / (B * D)      # per-sample mean over D, then mean over B
    return l1 + jnp.asarray(alpha, jnp.float32) * l2


def loss_m3_ref(logits, targets, resid_pred, resid_true, centers, alpha):
    """Pure-JAX reference mirroring the PyTorch forward (computed in f32)."""
    f32 = lambda x: x.astype(jnp.float32)
    logits, targets = f32(logits), f32(targets)
    resid_pred, resid_true, centers = f32(resid_pred), f32(resid_true), f32(centers)
    logp = jax.nn.log_softmax(logits, axis=1)
    kl_elem = jnp.where(targets > 0, targets * (jnp.log(targets) - logp), 0.0)
    l1 = jnp.mean(kl_elem)                                   # KLDivLoss 'mean' (all elems)
    sm = jax.nn.softmax(logits, axis=1)
    err = jnp.mean((resid_true[:, None, :]
                    - (resid_pred[:, None, :] + centers[None, :, :])) ** 2, axis=2)  # (B,K)
    l2 = jnp.mean(jnp.sum(sm * err, axis=1))
    return l1 + alpha * l2


if __name__ == "__main__":
    def make_inputs(key, B, K, D, dtype):
        k1, k2, k3, k4, k5 = jax.random.split(key, 5)
        logits = jax.random.normal(k1, (B, K), jnp.float32)                       # ypred[0]
        targets = jax.nn.softmax(jax.random.normal(k2, (B, K), jnp.float32), 1)   # ytrue[0]
        resid_pred = jax.random.normal(k3, (B, D), jnp.float32)                   # ypred[1]
        resid_true = jax.random.normal(k4, (B, D), jnp.float32)                   # ytrue[1]
        centers = jax.random.normal(k5, (K, D), jnp.float32)                      # kmeans centers
        return tuple(x.astype(dtype) for x in
                     (logits, targets, resid_pred, resid_true, centers))

    key = jax.random.PRNGKey(0)
    cases = [
        # (B,  K,  D,  dtype,         alpha, tile_b, tol)
        (32, 16, 32, jnp.float32,     0.5,   None,   1e-4),   # single full-batch tile
        (19, 16, 32, jnp.float32,     0.25,  None,   1e-4),   # B not multiple of 8: masked tail
        (64, 16, 32, jnp.bfloat16,    0.5,   16,     1e-3),   # bf16 streams, 2 chunks x 2 steps
    ]
    for idx, (B, K, D, dtype, alpha, tb_req, tol) in enumerate(cases):
        key, sub = jax.random.split(key)
        args = make_inputs(sub, B, K, D, dtype)
        fn = jax.jit(functools.partial(loss_m3_pallas, tile_b=tb_req))
        out = jax.block_until_ready(fn(*args, alpha))
        ref = loss_m3_ref(*args, alpha)
        assert jnp.allclose(out, ref, rtol=tol, atol=tol), (idx, out, ref)

    print("KERNEL_OK")
</pallas_src>

<mosaic_0001>
module attributes {stable_mosaic.version = 11 : i64} {
  func.func @_loss_m3_kernel(%arg0: i32, %arg1: i32, %arg2: memref<32x16xf32, #tpu.memory_space<vmem>>, %arg3: memref<32x16xf32, #tpu.memory_space<vmem>>, %arg4: memref<32x32xf32, #tpu.memory_space<vmem>>, %arg5: memref<32x32xf32, #tpu.memory_space<vmem>>, %arg6: memref<16x32xf32, #tpu.memory_space<vmem>>, %arg7: memref<1x16xf32, #tpu.memory_space<vmem>>, %arg8: memref<1x1x1xf32, #tpu.memory_space<vmem>>, %arg9: memref<1x1x1xf32, #tpu.memory_space<vmem>>) attributes {dimension_semantics = [#tpu.dimension_semantics<parallel>, #tpu.dimension_semantics<arbitrary>], iteration_bounds = array<i64: 1, 1>, scalar_prefetch = 0 : i64, scratch_operands = 0 : i64, tpu.core_type = #tpu.core_type<tc>, window_params = [{transform_indices = @transform_0, window_bounds = array<i64: 32, 16>}, {transform_indices = @transform_1, window_bounds = array<i64: 32, 16>}, {transform_indices = @transform_2, window_bounds = array<i64: 32, 32>}, {transform_indices = @transform_3, window_bounds = array<i64: 32, 32>}, {pipeline_mode = #tpu.pipeline_mode<synchronous>, transform_indices = @transform_4, window_bounds = array<i64: 16, 32>}, {pipeline_mode = #tpu.pipeline_mode<synchronous>, transform_indices = @transform_5, window_bounds = array<i64: 1, 16>}, {transform_indices = @transform_6, window_bounds = array<i64: 1, 1, 1>}, {transform_indices = @transform_7, window_bounds = array<i64: 1, 1, 1>}]} {
    %c0_i32 = arith.constant 0 : i32
    %0 = arith.cmpi eq, %arg1, %c0_i32 : i32
    %1 = arith.extui %0 : i1 to i32
    %c0_i32_0 = arith.constant 0 : i32
    %2 = arith.cmpi ne, %1, %c0_i32_0 : i32
    scf.if %2 {
      %cst_38 = arith.constant 0.000000e+00 : f32
      %76 = vector.broadcast %cst_38 : f32 to vector<1x1x1xf32>
      %c0_39 = arith.constant 0 : index
      %c0_40 = arith.constant 0 : index
      %c0_41 = arith.constant 0 : index
      %77 = vector.load %arg8[%c0_39, %c0_40, %c0_41] : memref<1x1x1xf32, #tpu.memory_space<vmem>>, vector<1x1x1xf32>
      tpu.vector_store %arg8[%c0_39, %c0_40, %c0_41], %76 {strides = array<i32>} : memref<1x1x1xf32, #tpu.memory_space<vmem>>, vector<1x1x1xf32>,
      %cst_42 = arith.constant 0.000000e+00 : f32
      %78 = vector.broadcast %cst_42 : f32 to vector<1x1x1xf32>
      %c0_43 = arith.constant 0 : index
      %c0_44 = arith.constant 0 : index
      %c0_45 = arith.constant 0 : index
      %79 = vector.load %arg9[%c0_43, %c0_44, %c0_45] : memref<1x1x1xf32, #tpu.memory_space<vmem>>, vector<1x1x1xf32>
      tpu.vector_store %arg9[%c0_43, %c0_44, %c0_45], %78 {strides = array<i32>} : memref<1x1x1xf32, #tpu.memory_space<vmem>>, vector<1x1x1xf32>,
    } else {
    }
    %c0 = arith.constant 0 : index
    %c0_1 = arith.constant 0 : index
    %3 = vector.load %arg2[%c0, %c0_1] : memref<32x16xf32, #tpu.memory_space<vmem>>, vector<32x16xf32>
    %c0_2 = arith.constant 0 : index
    %c0_3 = arith.constant 0 : index
    %4 = vector.load %arg3[%c0_2, %c0_3] : memref<32x16xf32, #tpu.memory_space<vmem>>, vector<32x16xf32>
    %c1_i32 = arith.constant 1 : i32
    %5 = arith.muli %arg0, %c1_i32 : i32
    %6 = arith.addi %5, %arg1 : i32
    %c32_i32 = arith.constant 32 : i32
    %7 = arith.muli %6, %c32_i32 : i32
    %8 = tpu.iota {dimensions = array<i32: 0>} : vector<32x1xi32>
    %9 = vector.broadcast %7 : i32 to vector<32x1xi32>
    %10 = arith.addi %8, %9 : vector<32x1xi32>
    %c32_i32_4 = arith.constant 32 : i32
    %11 = vector.broadcast %c32_i32_4 : i32 to vector<32x1xi32>
    %12 = arith.cmpi slt, %10, %11 : vector<32x1xi32>
    %cst = arith.constant dense<0xFF800000> : vector<32xf32>
    %13 = vector.multi_reduction <maximumf>, %3, %cst [1] : vector<32x16xf32> to vector<32xf32>
    %14 = vector.shape_cast %13 : vector<32xf32> to vector<32x1xf32>
    %15 = vector.broadcast %14 : vector<32x1xf32> to vector<32x16xf32>
    %16 = arith.subf %3, %15 : vector<32x16xf32>
    %17 = math.exp %16 : vector<32x16xf32>
    %cst_5 = arith.constant dense<0.000000e+00> : vector<32xf32>
    %18 = vector.multi_reduction <add>, %17, %cst_5 [1] : vector<32x16xf32> to vector<32xf32>
    %19 = vector.shape_cast %18 : vector<32xf32> to vector<32x1xf32>
    %20 = math.log %19 : vector<32x1xf32>
    %21 = vector.broadcast %19 : vector<32x1xf32> to vector<32x16xf32>
    %22 = arith.divf %17, %21 : vector<32x16xf32>
    %cst_6 = arith.constant 0.000000e+00 : f32
    %23 = vector.broadcast %cst_6 : f32 to vector<32x16xf32>
    %24 = arith.cmpf ogt, %4, %23 : vector<32x16xf32>
    %25 = math.log %4 : vector<32x16xf32>
    %26 = arith.mulf %4, %25 : vector<32x16xf32>
    %cst_7 = arith.constant 0.000000e+00 : f32
    %27 = vector.broadcast %cst_7 : f32 to vector<32x16xf32>
    %28 = arith.select %24, %26, %27 : vector<32x16xi1>, vector<32x16xf32>
    %29 = arith.mulf %4, %16 : vector<32x16xf32>
    %30 = arith.subf %28, %29 : vector<32x16xf32>
    %cst_8 = arith.constant dense<0.000000e+00> : vector<32xf32>
    %31 = vector.multi_reduction <add>, %30, %cst_8 [1] : vector<32x16xf32> to vector<32xf32>
    %32 = vector.shape_cast %31 : vector<32xf32> to vector<32x1xf32>
    %cst_9 = arith.constant dense<0.000000e+00> : vector<32xf32>
    %33 = vector.multi_reduction <add>, %4, %cst_9 [1] : vector<32x16xf32> to vector<32xf32>
    %34 = vector.shape_cast %33 : vector<32xf32> to vector<32x1xf32>
    %35 = arith.mulf %34, %20 : vector<32x1xf32>
    %36 = arith.addf %32, %35 : vector<32x1xf32>
    %c0_10 = arith.constant 0 : index
    %c0_11 = arith.constant 0 : index
    %37 = vector.load %arg6[%c0_10, %c0_11] : memref<16x32xf32, #tpu.memory_space<vmem>>, vector<16x32xf32>
    %c0_12 = arith.constant 0 : index
    %c0_13 = arith.constant 0 : index
    %38 = vector.load %arg5[%c0_12, %c0_13] : memref<32x32xf32, #tpu.memory_space<vmem>>, vector<32x32xf32>
    %c0_14 = arith.constant 0 : index
    %c0_15 = arith.constant 0 : index
    %39 = vector.load %arg4[%c0_14, %c0_15] : memref<32x32xf32, #tpu.memory_space<vmem>>, vector<32x32xf32>
    %40 = arith.subf %38, %39 : vector<32x32xf32>
    %41 = arith.mulf %40, %40 : vector<32x32xf32>
    %cst_16 = arith.constant dense<0.000000e+00> : vector<32xf32>
    %42 = vector.multi_reduction <add>, %41, %cst_16 [1] : vector<32x32xf32> to vector<32xf32>
    %43 = vector.shape_cast %42 : vector<32xf32> to vector<32x1xf32>
    %cst_17 = arith.constant dense<0.000000e+00> : vector<32x16xf32>
    %44 = tpu.matmul %40, %37, %cst_17 {dimension_numbers = #tpu.dot_dimension_numbers<[1], [1], [0], [0], [0, 0, 1, 0], [], []>} : vector<32x32xf32>, vector<16x32xf32>, vector<32x16xf32> -> vector<32x16xf32>
    %c0_18 = arith.constant 0 : index
    %c0_19 = arith.constant 0 : index
    %45 = vector.load %arg7[%c0_18, %c0_19] : memref<1x16xf32, #tpu.memory_space<vmem>>, vector<1x16xf32>
    %cst_20 = arith.constant 2.000000e+00 : f32
    %46 = vector.broadcast %cst_20 : f32 to vector<32x16xf32>
    %47 = arith.mulf %46, %44 : vector<32x16xf32>
    %48 = vector.broadcast %45 : vector<1x16xf32> to vector<32x16xf32>
    %49 = arith.subf %48, %47 : vector<32x16xf32>
    %50 = arith.mulf %22, %49 : vector<32x16xf32>
    %cst_21 = arith.constant dense<0.000000e+00> : vector<32xf32>
    %51 = vector.multi_reduction <add>, %50, %cst_21 [1] : vector<32x16xf32> to vector<32xf32>
    %52 = vector.shape_cast %51 : vector<32xf32> to vector<32x1xf32>
    %53 = arith.addf %43, %52 : vector<32x1xf32>
    %cst_22 = arith.constant 0.000000e+00 : f32
    %54 = vector.broadcast %cst_22 : f32 to vector<32x1xf32>
    %55 = arith.select %12, %36, %54 : vector<32x1xi1>, vector<32x1xf32>
    %cst_23 = arith.constant 0.000000e+00 : f32
    %56 = vector.broadcast %cst_23 : f32 to vector<32x1xf32>
    %57 = arith.select %12, %53, %56 : vector<32x1xi1>, vector<32x1xf32>
    %c0_24 = arith.constant 0 : index
    %c0_25 = arith.constant 0 : index
    %c0_26 = arith.constant 0 : index
    %58 = vector.load %arg8[%c0_24, %c0_25, %c0_26] : memref<1x1x1xf32, #tpu.memory_space<vmem>>, vector<1x1x1xf32>
    %59 = vector.shape_cast %55 : vector<32x1xf32> to vector<1x32x1xf32>
    %cst_27 = arith.constant dense<0.000000e+00> : vector<1xf32>
    %60 = vector.multi_reduction <add>, %59, %cst_27 [1, 2] : vector<1x32x1xf32> to vector<1xf32>
    %61 = vector.shape_cast %60 : vector<1xf32> to vector<1x1x1xf32>
    %62 = vector.extract %61[0, 0, 0] : f32 from vector<1x1x1xf32>
    %63 = vector.broadcast %62 : f32 to vector<1x1xf32>
    %64 = vector.shape_cast %63 : vector<1x1xf32> to vector<1x1x1xf32>
    %65 = arith.addf %58, %64 : vector<1x1x1xf32>
    %c0_28 = arith.constant 0 : index
    %c0_29 = arith.constant 0 : index
    %c0_30 = arith.constant 0 : index
    %66 = vector.load %arg8[%c0_28, %c0_29, %c0_30] : memref<1x1x1xf32, #tpu.memory_space<vmem>>, vector<1x1x1xf32>
    tpu.vector_store %arg8[%c0_28, %c0_29, %c0_30], %65 {strides = array<i32>} : memref<1x1x1xf32, #tpu.memory_space<vmem>>, vector<1x1x1xf32>,
    %c0_31 = arith.constant 0 : index
    %c0_32 = arith.constant 0 : index
    %c0_33 = arith.constant 0 : index
    %67 = vector.load %arg9[%c0_31, %c0_32, %c0_33] : memref<1x1x1xf32, #tpu.memory_space<vmem>>, vector<1x1x1xf32>
    %68 = vector.shape_cast %57 : vector<32x1xf32> to vector<1x32x1xf32>
    %cst_34 = arith.constant dense<0.000000e+00> : vector<1xf32>
    %69 = vector.multi_reduction <add>, %68, %cst_34 [1, 2] : vector<1x32x1xf32> to vector<1xf32>
    %70 = vector.shape_cast %69 : vector<1xf32> to vector<1x1x1xf32>
    %71 = vector.extract %70[0, 0, 0] : f32 from vector<1x1x1xf32>
    %72 = vector.broadcast %71 : f32 to vector<1x1xf32>
    %73 = vector.shape_cast %72 : vector<1x1xf32> to vector<1x1x1xf32>
    %74 = arith.addf %67, %73 : vector<1x1x1xf32>
    %c0_35 = arith.constant 0 : index
    %c0_36 = arith.constant 0 : index
    %c0_37 = arith.constant 0 : index
    %75 = vector.load %arg9[%c0_35, %c0_36, %c0_37] : memref<1x1x1xf32, #tpu.memory_space<vmem>>, vector<1x1x1xf32>
    tpu.vector_store %arg9[%c0_35, %c0_36, %c0_37], %74 {strides = array<i32>} : memref<1x1x1xf32, #tpu.memory_space<vmem>>, vector<1x1x1xf32>,
    return
  }
  func.func @transform_0(%arg0: i32, %arg1: i32) -> (i32, i32) {
    %c1_i32 = arith.constant 1 : i32
    %0 = arith.muli %arg0, %c1_i32 : i32
    %1 = arith.addi %0, %arg1 : i32
    %c0_i32 = arith.constant 0 : i32
    %2 = arith.minsi %1, %c0_i32 : i32
    %c0_i32_0 = arith.constant 0 : i32
    %c0_i32_1 = arith.constant 0 : i32
    return %2, %c0_i32_0 : i32, i32
  }
  func.func @transform_1(%arg0: i32, %arg1: i32) -> (i32, i32) {
    %c1_i32 = arith.constant 1 : i32
    %0 = arith.muli %arg0, %c1_i32 : i32
    %1 = arith.addi %0, %arg1 : i32
    %c0_i32 = arith.constant 0 : i32
    %2 = arith.minsi %1, %c0_i32 : i32
    %c0_i32_0 = arith.constant 0 : i32
    %c0_i32_1 = arith.constant 0 : i32
    return %2, %c0_i32_0 : i32, i32
  }
  func.func @transform_2(%arg0: i32, %arg1: i32) -> (i32, i32) {
    %c1_i32 = arith.constant 1 : i32
    %0 = arith.muli %arg0, %c1_i32 : i32
    %1 = arith.addi %0, %arg1 : i32
    %c0_i32 = arith.constant 0 : i32
    %2 = arith.minsi %1, %c0_i32 : i32
    %c0_i32_0 = arith.constant 0 : i32
    %c0_i32_1 = arith.constant 0 : i32
    return %2, %c0_i32_0 : i32, i32
  }
  func.func @transform_3(%arg0: i32, %arg1: i32) -> (i32, i32) {
    %c1_i32 = arith.constant 1 : i32
    %0 = arith.muli %arg0, %c1_i32 : i32
    %1 = arith.addi %0, %arg1 : i32
    %c0_i32 = arith.constant 0 : i32
    %2 = arith.minsi %1, %c0_i32 : i32
    %c0_i32_0 = arith.constant 0 : i32
    %c0_i32_1 = arith.constant 0 : i32
    return %2, %c0_i32_0 : i32, i32
  }
  func.func @transform_4(%arg0: i32, %arg1: i32) -> (i32, i32) {
    %c0_i32 = arith.constant 0 : i32
    %c0_i32_0 = arith.constant 0 : i32
    %c0_i32_1 = arith.constant 0 : i32
    return %c0_i32, %c0_i32_0 : i32, i32
  }
  func.func @transform_5(%arg0: i32, %arg1: i32) -> (i32, i32) {
    %c0_i32 = arith.constant 0 : i32
    %c0_i32_0 = arith.constant 0 : i32
    %c0_i32_1 = arith.constant 0 : i32
    return %c0_i32, %c0_i32_0 : i32, i32
  }
  func.func @transform_6(%arg0: i32, %arg1: i32) -> (i32, i32, i32) {
    %c0_i32 = arith.constant 0 : i32
    %c0_i32_0 = arith.constant 0 : i32
    %c0_i32_1 = arith.constant 0 : i32
    return %arg0, %c0_i32, %c0_i32_0 : i32, i32, i32
  }
  func.func @transform_7(%arg0: i32, %arg1: i32) -> (i32, i32, i32) {
    %c0_i32 = arith.constant 0 : i32
    %c0_i32_0 = arith.constant 0 : i32
    %c0_i32_1 = arith.constant 0 : i32
    return %arg0, %c0_i32, %c0_i32_0 : i32, i32, i32
  }
}

</mosaic_0001>

<bundles_post_ra>
// kernel: loss_m3_pallas.1
= control target key start
LH: loop header
LB: loop body
LE: loop exit
PB: predicated region body
PF: predicated region fallthrough
CT: control target
= control target key end

     0   :  { %13 = vsyncpa [#allocation3], 0  ;;  %vm186_vm0 = vcmask 130048   ;;  %vm317_vm1 = vcmask 261120   ;;  %s874_s0 = inlined_call_operand.vmem [shape: f32[32,16], index: 0, kind: input, shape index: {}]   ;;  %s875_s1 = inlined_call_operand.vmem [shape: f32[32,16], index: 1, kind: input, shape index: {}]   ;;  %s876_s2 = inlined_call_operand.vmem [shape: f32[32,32], index: 2, kind: input, shape index: {}]   ;;  %s877_s3 = inlined_call_operand.vmem [shape: f32[32,32], index: 3, kind: input, shape index: {}]   ;;  %s878_s4 = inlined_call_operand.vmem [shape: f32[16,32], index: 4, kind: input, shape index: {}]   ;;  %s879_s5 = inlined_call_operand.vmem [shape: f32[1,16], index: 5, kind: input, shape index: {}]   ;;  %s880_s6 = inlined_call_operand.hbm [shape: f32[1,1,1], index: 6, kind: output, shape index: {0}]   ;;  %s881_s7 = inlined_call_operand.hbm [shape: f32[1,1,1], index: 7, kind: output, shape index: {1}]  }
   0x1   :  { %v162_v0 = vld [vmem:[%s874_s0] sm:$0xff]  ;;  %v164_v1 = vld [vmem:[%s874_s0 + $0x10] sm:$0xff]  ;;  %v163_v2 = vld [vmem:[%s874_s0 + $0x8] sm:$0xff] }
   0x2   :  { %v187_v3 = vsel %vm186_vm0, %v162_v0, -inf  ;;  %v193_v4 = vsel %vm186_vm0, %v164_v1, -inf  ;;  %v165_v5 = vld [vmem:[%s874_s0 + $0x18] sm:$0xff]  ;;  %v300_v6 = vld [vmem:[%s878_s4 + $0x8] sm:$0xff]  ;;  %v299_v7 = vld [vmem:[%s878_s4] sm:$0xff]  ;;  %v190_v10 = vsel %vm186_vm0, %v163_v2, -inf }
   0x3   :  { %188 = vmax.xlane.f32.xlu0 %v187_v3  ;;  %194 = vmax.xlane.f32.xlu1 %v193_v4  ;;  %v301_v8 = vld [vmem:[%s877_s3] sm:$0xff]  ;;  %v196_v11 = vsel %vm186_vm0, %v165_v5, -inf  ;;  %v302_v13 = vld [vmem:[%s877_s3 + $0x8] sm:$0xff]  ;;  %v303_v14 = vld [vmem:[%s877_s3 + $0x10] sm:$0xff] }
   0x4   :  { %v305_v9 = vld [vmem:[%s876_s2] sm:$0xff]  ;;  %583 = vmatprep.subr.msk.mxu0 %vm317_vm1, %v300_v6  ;;  %593 = vmatprep.subr.msk.mxu1 %vm317_vm1, %v300_v6  ;;  %v307_v15 = vld [vmem:[%s876_s2 + $0x10] sm:$0xff]  ;;  %v306_v16 = vld [vmem:[%s876_s2 + $0x8] sm:$0xff] }
   0x5   :  { %v753_v12 = vsub.f32 %v301_v8, %v305_v9  ;;  %584 = vmatpush3.xpose.msk.msra.mxu0 %vm317_vm1, %v300_v6  ;;  %595 = vmatpush3.xpose.msk.msra.mxu1 %vm317_vm1, %v300_v6  ;;  %v769_v17 = vsub.f32 %v303_v14, %v307_v15  ;;  %v304_v18 = vld [vmem:[%s877_s3 + $0x18] sm:$0xff] }
   0x6   :  { %v308_v19 = vld [vmem:[%s876_s2 + $0x18] sm:$0xff]  ;;  %585 = vmatprep.subr.msk.mxu0 %vm317_vm1, %v299_v7 }
   0x7   :  { %587 = vmatprep.mubr.msk.f32.mxu0 %vm317_vm1, %v753_v12 }
   0x8   :  { %14 = vsyncpa [#allocation5], 0  ;;  %191 = vmax.xlane.f32.xlu0 %v190_v10  ;;  %197 = vmax.xlane.f32.xlu1 %v196_v11  ;;  %v781_v20 = vsub.f32 %v302_v13, %v306_v16  ;;  %v785_v21 = vsub.f32 %v304_v18, %v308_v19  ;;  %v166_v22 = vld [vmem:[%s875_s1] sm:$0xff]  ;;  %v167_v27 = vld [vmem:[%s875_s1 + $0x8] sm:$0xff]  ;;  %v315_v13 = vmul.f32 %v769_v17, %v769_v17  ;;  %vm477_vm6 = vcmask 7168   ;;  %s681_s11 = smov [#allocation2]  }
   0x9   :  { %594 = vmatprep.subr.msk.mxu1 %vm317_vm1, %v299_v7  ;;  %590 = vmatprep.mubr.msk.f32.mxu1 %vm317_vm1, %v769_v17  ;;  %604 = vlog2.f32 %v166_v22  ;;  %v168_v36 = vld [vmem:[%s875_s1 + $0x10] sm:$0xff]  ;;  %v169_v40 = vld [vmem:[%s875_s1 + $0x18] sm:$0xff]  ;;  %vm239_vm2 = vcmp.gt.f32.partialorder %v166_v22, 0.0  ;;  %v279_v54 = vsel %vm186_vm0, %v166_v22, 0.0  ;;  %vm240_vm3 = vcmp.gt.f32.partialorder %v167_v27, 0.0  ;;  %s524_s12 = sshll.u32 %s681_s11, 4  ;;  %s525_s12 = int_to_ptr.vmem [resolvable:$true] %s524_s12 }
   0xa   :  { %586 = vmatpush3.xpose.msk.msra.mxu0 %vm317_vm1, %v299_v7  ;;  %596 = vmatpush3.xpose.msk.msra.mxu1 %vm317_vm1, %v299_v7  ;;  %606 = vlog2.f32 %v167_v27  ;;  %v282_v60 = vsel %vm186_vm0, %v167_v27, 0.0  ;;  %v314_v3 = vmul.f32 %v781_v20, %v781_v20  ;;  %vm241_vm4 = vcmp.gt.f32.partialorder %v168_v36, 0.0  ;;  %s636_s13 = scalar_lea.vmem %s525_s12, 16  ;;  %s640_s14 = scalar_lea.vmem %s525_s12, 32 }
   0xb   :  { %vm242_vm5 = vcmp.gt.f32.partialorder %v169_v40, 0.0  ;;  %v324_v18 = vsel %vm317_vm1, %v315_v13, 0.0  ;;  %vm159_vm7 = vcmask 0   ;;  %p637_p0 = scmp.ne.s32.totalorder %s525_s12, %s636_s13  ;;  %p641_p1 = scmp.lt.s32.totalorder %s525_s12, %s525_s12 }
   0xc   :  { %v321_v9 = vsel %vm317_vm1, %v314_v3, 0.0  ;;  %p642_p2 = scmp.lt.s32.totalorder %s640_s14, %s636_s13 }
   0xd   :  { %588 = vmatmul.mubr.msk.f32.vlgmr.msra.gmra.mxu0 %vm317_vm1, %v781_v20  ;;  %591 = vmatmul.mubr.msk.f32.vlgmr.msra.gmra.mxu1 %vm317_vm1, %v785_v21 }
   0xe   :  { %p643_p3 = por %p642_p2, %p641_p1 }
  0x10   :  { %p644_p4 = pnand %p643_p3, %p637_p0 }
  0x16   :  { %v605_v37 = vpop.eup %604 }
  0x17   :  { %v244_v38 = vmul.f32 0.6931472, %v605_v37  ;;  %v607_v39 = vpop.eup %606 }
  0x18   :  { %v246_v45 = vmul.f32 0.6931472, %v607_v39 }
  0x19   :  { %v251_v44 = vmul.f32 %v244_v38, %v166_v22 }
  0x1a   :  { %v252_v52 = vmul.f32 %v246_v45, %v167_v27 }
  0x1b   :  { %v255_v51 = vsel %vm239_vm2, %v251_v44, 0.0 }
  0x1c   :  { %v256_v58 = vsel %vm240_vm3, %v252_v52, 0.0 }
  0x8c   :  { %v189_v23 = vpop.xlane.xlu0 %188  ;;  %v195_v24 = vpop.xlane.xlu1 %194 }
  0x8d   :  { %v199_v25 = vsub.f32 %v162_v0, %v189_v23  ;;  %v201_v26 = vsub.f32 %v164_v1, %v195_v24  ;;  %v285_v1 = vsel %vm186_vm0, %v168_v36, 0.0 }
  0x8f   :  { %v203_v28 = vmul.f32 1.442695, %v199_v25  ;;  %v207_v29 = vmul.f32 1.442695, %v201_v26  ;;  %v259_v49 = vmul.f32 %v199_v25, %v166_v22  ;;  %v261_v4 = vmul.f32 %v201_v26, %v168_v36 }
  0x91   :  { %v192_v30 = vpop.xlane.xlu0 %191  ;;  %v198_v31 = vpop.xlane.xlu1 %197  ;;  %608 = vpow2.f32 %v203_v28  ;;  %v263_v57 = vsub.f32 %v255_v51, %v259_v49 }
  0x92   :  { %v200_v32 = vsub.f32 %v163_v2, %v192_v30  ;;  %v799_v33 = vsub.f32 %v165_v5, %v198_v31  ;;  %610 = vpow2.f32 %v207_v29  ;;  %v313_v2 = vmul.f32 %v753_v12, %v753_v12  ;;  %v576_v30 = vld [vmem:[%s879_s5] ss:$0 sm:$0xff] }
  0x93   :  { %v267_v61 = vsel %vm186_vm0, %v263_v57, 0.0  ;;  %v288_v12 = vsel %vm186_vm0, %v169_v40, 0.0 }
  0x94   :  { %v205_v34 = vmul.f32 1.442695, %v200_v32  ;;  %v209_v35 = vmul.f32 1.442695, %v799_v33  ;;  %v260_v56 = vmul.f32 %v200_v32, %v167_v27  ;;  %v318_v8 = vsel %vm317_vm1, %v313_v2, 0.0 }
  0x95   :  { %v262_v14 = vmul.f32 %v799_v33, %v169_v40 }
  0x96   :  { %612 = vpow2.f32 %v205_v34  ;;  %v264_v62 = vsub.f32 %v256_v58, %v260_v56 }
  0x97   :  { %614 = vpow2.f32 %v209_v35 }
  0x98   :  { %616 = vlog2.f32 %v168_v36  ;;  %v270_v5 = vsel %vm186_vm0, %v264_v62, 0.0 }
  0x99   :  { %618 = vlog2.f32 %v169_v40 }
  0x9e   :  { %v808_v41 = vpop.eup %608 }
  0x9f   :  { %v810_v42 = vpop.eup %610  ;;  %v211_v43 = vsel %vm186_vm0, %v808_v41, 0.0 }
  0xa0   :  { %212 = vadd.xlane.f32.xlu0 %v211_v43  ;;  %v217_v46 = vsel %vm186_vm0, %v810_v42, 0.0 }
  0xa3   :  { %v816_v47 = vpop.eup %612 }
  0xa4   :  { %v818_v48 = vpop.eup %614  ;;  %v214_v50 = vsel %vm186_vm0, %v816_v47, 0.0  ;;  %218 = vadd.xlane.f32.xlu0 %v217_v46 }
  0xa5   :  { %215 = vadd.xlane.f32.xlu1 %v214_v50  ;;  %v617_v53 = vpop.eup %616  ;;  %v220_v55 = vsel %vm186_vm0, %v818_v48, 0.0 }
  0xa6   :  { %v248_v59 = vmul.f32 0.6931472, %v617_v53  ;;  %v619_v0 = vpop.eup %618 }
  0xa7   :  { %v250_v7 = vmul.f32 0.6931472, %v619_v0 }
  0xa8   :  { %280 = vadd.xlane.f32.xlu0 %v279_v54  ;;  %v253_v63 = vmul.f32 %v248_v59, %v168_v36 }
  0xa9   :  { %221 = vadd.xlane.f32.xlu1 %v220_v55  ;;  %v254_v11 = vmul.f32 %v250_v7, %v169_v40 }
  0xaa   :  { %v257_v6 = vsel %vm241_vm4, %v253_v63, 0.0 }
  0xab   :  { %v265_v10 = vsub.f32 %v257_v6, %v261_v4  ;;  %v258_v16 = vsel %vm242_vm5, %v254_v11, 0.0 }
  0xac   :  { %268 = vadd.xlane.f32.xlu0 %v267_v61  ;;  %v266_v19 = vsub.f32 %v258_v16, %v262_v14 }
  0xad   :  { %283 = vadd.xlane.f32.xlu1 %v282_v60  ;;  %v273_v15 = vsel %vm186_vm0, %v265_v10, 0.0  ;;  %v316_v10 = vmul.f32 %v785_v21, %v785_v21 }
  0xae   :  { %v276_v20 = vsel %vm186_vm0, %v266_v19, 0.0 }
  0xaf   :  { %v327_v19 = vsel %vm317_vm1, %v316_v10, 0.0 }
  0xb0   :  { %286 = vadd.xlane.f32.xlu0 %v285_v1 }
  0xb1   :  { %271 = vadd.xlane.f32.xlu1 %v270_v5 }
  0xb4   :  { %322 = vadd.xlane.f32.xlu0 %v321_v9 }
  0xb5   :  { %319 = vadd.xlane.f32.xlu1 %v318_v8 }
  0xb8   :  { %289 = vadd.xlane.f32.xlu0 %v288_v12 }
  0xb9   :  { %274 = vadd.xlane.f32.xlu1 %v273_v15 }
  0xbd   :  { %325 = vadd.xlane.f32.xlu1 %v324_v18 }
  0xc1   :  { %277 = vadd.xlane.f32.xlu1 %v276_v20 }
  0xcd   :  { %v589_v23 = vpop.f32.mrf.mxu0  ;;  %v592_v28 = vpop.f32.mrf.mxu1 }
  0xce   :  { %v435_v35 = vmul.f32 2.0, %v589_v23  ;;  %v437_v53 = vmul.f32 2.0, %v592_v28 }
  0xcf   :  { %v414_v25 = vpop.f32.mrf.mxu0  ;;  %v424_v33 = vpop.f32.mrf.mxu1 }
  0xd0   :  { %v434_v29 = vmul.f32 2.0, %v414_v25  ;;  %v436_v38 = vmul.f32 2.0, %v424_v33  ;;  %v445_v46 = vsub.f32 %v576_v30, %v435_v35  ;;  %v447_v4 = vsub.f32 %v576_v30, %v437_v53 }
  0xd2   :  { %v444_v36 = vsub.f32 %v576_v30, %v434_v29  ;;  %v446_v54 = vsub.f32 %v576_v30, %v436_v38 }
 0x129   :  { %v213_v22 = vpop.xlane.xlu0 %212 }
 0x12a   :  { %620 = vlog2.f32 %v213_v22 }
 0x12b   :  { %622 = vrcp.f32 %v213_v22 }
 0x12d   :  { %v219_v24 = vpop.xlane.xlu0 %218 }
 0x12e   :  { %v216_v17 = vpop.xlane.xlu1 %215 }
 0x12f   :  { %624 = vlog2.f32 %v216_v17 }
 0x130   :  { %626 = vrcp.f32 %v216_v17 }
 0x131   :  { %628 = vlog2.f32 %v219_v24  ;;  %v281_v27 = vpop.xlane.xlu0 %280 }
 0x132   :  { %630 = vrcp.f32 %v219_v24  ;;  %v222_v26 = vpop.xlane.xlu1 %221 }
 0x133   :  { %632 = vrcp.f32 %v222_v26 }
 0x134   :  { %634 = vlog2.f32 %v222_v26  ;;  %v680_v26 = vmov 0.0  }
 0x135   :  { %v269_v32 = vpop.xlane.xlu0 %268  ;;  %160 = vst.msk [vmem:[#allocation2] sm:$0x1] %vm159_vm7, %v680_v26  ;;  %161 = vst.msk [vmem:[#allocation4] sm:$0x1] %vm159_vm7, %v680_v26 }
 0x136   :  { %v284_v31 = vpop.xlane.xlu1 %283 }
 0x137   :  { %v621_v34 = vpop.eup %620 }
 0x138   :  { %v623_v37 = vpop.eup %622  ;;  %v224_v44 = vmul.f32 0.6931472, %v621_v34 }
 0x139   :  { %v232_v40 = vmul.f32 %v623_v37, %v808_v41  ;;  %v287_v43 = vpop.xlane.xlu0 %286 }
 0x13a   :  { %v272_v39 = vpop.xlane.xlu1 %271  ;;  %v291_v59 = vmul.f32 %v281_v27, %v224_v44 }
 0x13b   :  { %v448_v49 = vmul.f32 %v444_v36, %v232_v40 }
 0x13c   :  { %v625_v45 = vpop.eup %624  ;;  %v295_v8 = vadd.f32 %v291_v59, %v269_v32 }
 0x13d   :  { %v627_v50 = vpop.eup %626  ;;  %v226_v51 = vmul.f32 0.6931472, %v625_v45  ;;  %v452_v56 = vsel %vm186_vm0, %v448_v49, 0.0  ;;  %v323_v62 = vpop.xlane.xlu0 %322 }
 0x13e   :  { %v629_v52 = vpop.eup %628  ;;  %v320_v55 = vpop.xlane.xlu1 %319  ;;  %v234_v57 = vmul.f32 %v627_v50, %v816_v47  ;;  %453 = vadd.xlane.f32.xlu1 %v452_v56 }
 0x13f   :  { %v631_v58 = vpop.eup %630  ;;  %v292_v60 = vmul.f32 %v284_v31, %v226_v51  ;;  %v228_v41 = vmul.f32 0.6931472, %v629_v52 }
 0x140   :  { %v449_v61 = vmul.f32 %v445_v46, %v234_v57  ;;  %v236_v63 = vmul.f32 %v631_v58, %v810_v42  ;;  %v633_v0 = vpop.eup %632 }
 0x141   :  { %v296_v1 = vadd.f32 %v292_v60, %v272_v39  ;;  %v293_v2 = vmul.f32 %v287_v43, %v228_v41  ;;  %v635_v3 = vpop.eup %634  ;;  %v238_v7 = vmul.f32 %v633_v0, %v818_v48  ;;  %v290_v16 = vpop.xlane.xlu0 %289  ;;  %v478_v48 = vsel %vm477_vm6, %v295_v8, 0.0 }
 0x142   :  { %v455_v5 = vsel %vm186_vm0, %v449_v61, 0.0  ;;  %v275_v6 = vpop.xlane.xlu1 %274  ;;  %v450_v47 = vmul.f32 %v446_v54, %v236_v63  ;;  %v230_v12 = vmul.f32 0.6931472, %v635_v3  ;;  %v476_v54 = vld [vmem:[#allocation2] sm:$0x1] }
 0x143   :  { %456 = vadd.xlane.f32.xlu0 %v455_v5  ;;  %v451_v9 = vmul.f32 %v447_v4, %v238_v7  ;;  %v479_v42 = vsel %vm477_vm6, %v296_v1, 0.0  ;;  %v297_v11 = vadd.f32 %v293_v2, %v275_v6 }
 0x144   :  { %v458_v15 = vsel %vm186_vm0, %v450_v47, 0.0  ;;  %v480_v18 = vadd.f32 %v479_v42, %v478_v48  ;;  %v294_v21 = vmul.f32 %v290_v16, %v230_v12 }
 0x145   :  { %v461_v14 = vsel %vm186_vm0, %v451_v9, 0.0  ;;  %v481_v20 = vsel %vm477_vm6, %v297_v11, 0.0 }
 0x146   :  { %v326_v13 = vpop.xlane.xlu1 %325  ;;  %462 = vadd.xlane.f32.xlu1 %v461_v14  ;;  %v482_v17 = vadd.f32 %v481_v20, %v480_v18 }
 0x147   :  { %459 = vadd.xlane.f32.xlu0 %v458_v15 }
 0x14a   :  { %v278_v22 = vpop.xlane.xlu1 %277 }
 0x14b   :  { %v298_v23 = vadd.f32 %v294_v21, %v278_v22  ;;  %328 = vadd.xlane.f32.xlu0 %v327_v19 }
 0x14d   :  { %v483_v24 = vsel %vm477_vm6, %v298_v23, 0.0 }
 0x14e   :  { %v484_v25 = vadd.f32 %v483_v24, %v482_v17 }
 0x150   :  { %485 = vadd.xlane.f32.xlu0 %v484_v25 }
 0x1c7   :  { %v454_v27 = vpop.xlane.xlu1 %453 }
 0x1c8   :  { %v464_v30 = vadd.f32 %v454_v27, %v320_v55 }
 0x1ca   :  { %v499_v34 = vsel %vm477_vm6, %v464_v30, 0.0 }
 0x1cc   :  { %v457_v28 = vpop.xlane.xlu0 %456 }
 0x1cd   :  { %v465_v29 = vadd.f32 %v457_v28, %v323_v62 }
 0x1cf   :  { %v500_v32 = vsel %vm477_vm6, %v465_v29, 0.0  ;;  %v463_v37 = vpop.xlane.xlu1 %462 }
 0x1d0   :  { %v460_v31 = vpop.xlane.xlu0 %459  ;;  %v501_v36 = vadd.f32 %v500_v32, %v499_v34 }
 0x1d1   :  { %v466_v33 = vadd.f32 %v460_v31, %v326_v13 }
 0x1d3   :  { %v502_v35 = vsel %vm477_vm6, %v466_v33, 0.0 }
 0x1d4   :  { %v329_v38 = vpop.xlane.xlu0 %328  ;;  %v503_v40 = vadd.f32 %v502_v35, %v501_v36 }
 0x1d5   :  { %v467_v39 = vadd.f32 %v463_v37, %v329_v38 }
 0x1d7   :  { %v504_v43 = vsel %vm477_vm6, %v467_v39, 0.0 }
 0x1d8   :  { %v505_v44 = vadd.f32 %v504_v43, %v503_v40 }
 0x1d9   :  { %v486_v45 = vpop.xlane.xlu0 %485 }
 0x1da   :  { %506 = vadd.xlane.f32.xlu1 %v505_v44  ;;  %v487_v46 = vrot.slane %v486_v45, 4 }
 0x1dc   :  { %v488_v49 = vadd.f32 %v487_v46, %v486_v45 }
 0x1de   :  { %v489_v50 = vrot.slane %v488_v49, 2 }
 0x1e0   :  { %v490_v51 = vadd.f32 %v489_v50, %v488_v49 }
 0x1e2   :  { %v491_v52 = vrot.slane %v490_v51, 1 }
 0x1e4   :  { %v492_v53 = vadd.f32 %v491_v52, %v490_v51 }
 0x1e6   :  { %597 = vpush %v492_v53 }
 0x217   :  { %s598_s5 = spop %597 }
 0x218   :  { %v494_v55 = vstv %s598_s5 }
 0x219   :  { %v495_v56 = vadd.f32 %v494_v55, %v476_v54 }
 0x21b   :  { %497 = vst.msk [vmem:[#allocation2] sm:$0x1] %vm159_vm7, %v495_v56 }
 0x21c   :  { %647 = shalt.err (!%p644_p4)
}
 0x21d   :  { %527 = dma.vmem_to_hbm [thread:$0]  %s525_s12, 16, %s880_s6, [#allocation3]   ;;  %v498_v63 = vld [vmem:[#allocation4] sm:$0x1] }
 0x21e   :  { %s682_s0 = smov [#allocation4]  }
 0x21f   :  { %s534_s4 = sshll.u32 %s682_s0, 4  ;;  %s535_s4 = int_to_ptr.vmem [resolvable:$true] %s534_s4 }
 0x220   :  { %s656_s18 = scalar_lea.vmem %s535_s4, 16  ;;  %s660_s6 = scalar_lea.vmem %s535_s4, 32 }
 0x221   :  { %p657_p5 = scmp.ne.s32.totalorder %s535_s4, %s656_s18  ;;  %p661_p6 = scmp.lt.s32.totalorder %s535_s4, %s535_s4 }
 0x222   :  { %p662_p7 = scmp.lt.s32.totalorder %s660_s6, %s656_s18 }
 0x224   :  { %p663_p8 = por %p662_p7, %p661_p6 }
 0x226   :  { %p664_p9 = pnand %p663_p8, %p657_p5 }
 0x263   :  { %v507_v57 = vpop.xlane.xlu1 %506 }
 0x264   :  { %v508_v58 = vrot.slane %v507_v57, 4 }
 0x266   :  { %v509_v59 = vadd.f32 %v508_v58, %v507_v57 }
 0x268   :  { %v510_v60 = vrot.slane %v509_v59, 2 }
 0x26a   :  { %v511_v41 = vadd.f32 %v510_v60, %v509_v59 }
 0x26c   :  { %v512_v61 = vrot.slane %v511_v41, 1 }
 0x26e   :  { %v513_v62 = vadd.f32 %v512_v61, %v511_v41 }
 0x270   :  { %599 = vpush %v513_v62 }
 0x2a1   :  { %s600_s17 = spop %599 }
 0x2a2   :  { %v515_v0 = vstv %s600_s17 }
 0x2a3   :  { %v516_v1 = vadd.f32 %v515_v0, %v498_v63 }
 0x2a5   :  { %517 = vst.msk [vmem:[#allocation4] sm:$0x1] %vm159_vm7, %v516_v1 }
 0x2a6   :  { %667 = shalt.err (!%p664_p9)
}
 0x2a7   :  { %537 = dma.vmem_to_hbm [thread:$0]  %s535_s4, 16, %s881_s7, [#allocation5]  }
 0x2a8   :  { %676 = dma.done.wait [#allocation3], 16  }
 0x2a9   :  { %677 = vsyncadd [#allocation3], 4294967280 }
 0x2aa   :  { %678 = dma.done.wait [#allocation5], 16  }
 0x2ab   :  { %679 = vsyncadd [#allocation5], 4294967280 }
 0x2ac   :  { %544 = vsyncpa [#allocation3], 1 }
 0x2ad   :  { %545 = vsyncpa [#allocation5], 1 }

</bundles_post_ra>
